<compile_context>
chip_gen: v6e
topology: v6e:2x2x1
jax: 0.10.0
libtpu: 0.0.40
codegen_flags: <defaults>
</compile_context>

<pallas_src>
import functools

import jax
import jax.numpy as jnp
from jax.experimental import pallas as pl
from jax.experimental.pallas import tpu as pltpu


def _round_up(x, m):
    return (x + m - 1) // m * m


def _update_gate_kernel(x_ref, h_ref, wx_ref, wh_ref, out_ref, *, compute_dtype):
    # Two MXU matmuls into one f32 accumulator; sigmoid on f32 (EUP); single
    # cast at the lane-dense (tn multiple of 128) store.
    x = x_ref[...].astype(compute_dtype)
    h = h_ref[...].astype(compute_dtype)
    acc = jnp.dot(x, wx_ref[...], preferred_element_type=jnp.float32)
    acc += jnp.dot(h, wh_ref[...], preferred_element_type=jnp.float32)
    out_ref[...] = jax.nn.sigmoid(acc).astype(out_ref.dtype)


class UpdateGate:
    """z = sigmoid(x @ w_x.T + h_old @ w_h.T); weights in PyTorch (out, in) layout."""

    def __init__(self, w_x, w_h, *, weight_dtype=jnp.bfloat16,
                 vmem_budget_bytes=24 * 1024 * 1024):
        H, In = w_x.shape
        assert w_h.shape == (H, H)
        self.input_size = In
        self.hidden_size = H
        self.k = In + H
        self.weight_dtype = jnp.dtype(weight_dtype)

        # ---- one-time weight prep (outside the hot path) --------------------
        # Lane-dense output: pad N (hidden) up to a multiple of 128.
        self.h_pad = _round_up(H, 128)
        wx_t = w_x.T                                   # (In, H)
        wh_t = w_h.T                                   # (H,  H)
        if self.h_pad != H:
            pad = ((0, 0), (0, self.h_pad - H))
            wx_t = jnp.pad(wx_t, pad)
            wh_t = jnp.pad(wh_t, pad)

        # ---- VMEM-budget-aware output-column tile ---------------------------
        w_bytes = self.weight_dtype.itemsize
        candidates = [tn for tn in range(128, self.h_pad + 1, 128)
                      if self.h_pad % tn == 0]
        block_n = 128
        for tn in sorted(candidates, reverse=True):
            # double-buffered (K, tn) strips for both weight operands
            if 2 * self.k * tn * w_bytes <= vmem_budget_bytes:
                block_n = tn
                break
        # v7x has 2 TensorCores: keep >= 2 steps on the "parallel" N axis when
        # H_pad allows it (no effect on single-TC v5e/v6e).
        if self.h_pad // block_n < 2 and self.h_pad >= 256:
            for tn in sorted(candidates, reverse=True):
                if self.h_pad // tn >= 2 and 2 * self.k * tn * w_bytes <= vmem_budget_bytes:
                    block_n = tn
                    break
        self.block_n = block_n
        self.n_tiles = self.h_pad // block_n

        # ---- pre-block weights: contiguous (n_tiles, K_i, tn) tiles ---------
        # One contiguous DMA per grid step instead of K strided row chunks.
        def _preblock(w_t):
            k_i = w_t.shape[0]
            w_t = w_t.reshape(k_i, self.n_tiles, self.block_n).transpose(1, 0, 2)
            return jnp.asarray(w_t, dtype=self.weight_dtype)

        self.w_x = _preblock(wx_t)                     # (n_tiles, In, tn)
        self.w_h = _preblock(wh_t)                     # (n_tiles, H,  tn)

    def __call__(self, x, h_old):
        B = x.shape[0]
        assert x.shape == (B, self.input_size)
        assert h_old.shape == (B, self.hidden_size)
        assert x.dtype == h_old.dtype

        In, H, tn = self.input_size, self.hidden_size, self.block_n
        h_pad = self.h_pad
        w_bytes = self.weight_dtype.itemsize
        in_bytes = jnp.dtype(x.dtype).itemsize

        # Explicit scoped-VMEM limit: enough for double-buffered weight strips,
        # the resident LHS blocks and the output tile (capped at v7x physical).
        vmem_est = (2 * self.k * tn * w_bytes           # weight strips (x + h)
                    + 2 * B * self.k * in_bytes         # resident LHS blocks
                    + 2 * B * tn * in_bytes)            # output tiles
        vmem_limit = min(64 * 1024 * 1024, max(32 * 1024 * 1024, 2 * vmem_est))

        cost = pl.CostEstimate(
            flops=2 * B * self.k * h_pad,
            transcendentals=B * h_pad,
            bytes_accessed=(self.w_x.size + self.w_h.size) * w_bytes
                           + (x.size + h_old.size + B * h_pad) * in_bytes,
        )

        kernel = functools.partial(_update_gate_kernel,
                                   compute_dtype=self.weight_dtype)

        out = pl.pallas_call(
            kernel,
            out_shape=jax.ShapeDtypeStruct((B, h_pad), x.dtype),
            grid_spec=pltpu.PrefetchScalarGridSpec(
                num_scalar_prefetch=0,
                grid=(self.n_tiles,),
                in_specs=[
                    # LHS operands stay resident (constant block index).
                    pl.BlockSpec((B, In), lambda n: (0, 0)),
                    pl.BlockSpec((B, H), lambda n: (0, 0)),
                    # Pre-blocked weights: one contiguous (K_i, tn) tile / step.
                    pl.BlockSpec((pl.Squeezed(), In, tn), lambda n: (n, 0, 0)),
                    pl.BlockSpec((pl.Squeezed(), H, tn), lambda n: (n, 0, 0)),
                ],
                out_specs=pl.BlockSpec((B, tn), lambda n: (0, n)),
            ),
            compiler_params=pltpu.CompilerParams(
                # Independent output-column tiles -> shard across v7x's 2 TCs.
                dimension_semantics=("parallel",),
                vmem_limit_bytes=vmem_limit,
            ),
            cost_estimate=cost,
        )(x, h_old, self.w_x, self.w_h)

        # Drop the lane padding.
        return out[:, : self.hidden_size]


if __name__ == "__main__":
    key = jax.random.PRNGKey(0)
    k1, k2, k3, k4 = jax.random.split(key, 4)

    batch = 2
    input_size = 16
    hidden_size = 32

    x = jax.random.normal(k1, (batch, input_size), dtype=jnp.float32)
    h_old = jax.random.normal(k2, (batch, hidden_size), dtype=jnp.float32)
    # Deterministic "Linear(bias=False)" weights, PyTorch (out, in) layout.
    w_x = jax.random.normal(k3, (hidden_size, input_size), dtype=jnp.float32) * 0.1
    w_h = jax.random.normal(k4, (hidden_size, hidden_size), dtype=jnp.float32) * 0.1

    # Reference in plain JAX (f32).
    ref = jax.nn.sigmoid(x @ w_x.T + h_old @ w_h.T)

    # f32 weight path: tight-tolerance correctness check of the kernel itself.
    gate_f32 = UpdateGate(w_x, w_h, weight_dtype=jnp.float32)
    out_f32 = jax.block_until_ready(gate_f32(x, h_old))
    assert out_f32.shape == (batch, hidden_size)
    assert jnp.allclose(out_f32, ref, atol=1e-5, rtol=1e-5)

    # Default bf16 weight-streaming path (half the HBM weight traffic).
    gate = UpdateGate(w_x, w_h)
    out = jax.block_until_ready(gate(x, h_old))
    assert out.shape == (batch, hidden_size)
    assert out.dtype == x.dtype
    assert jnp.allclose(out, ref, atol=2e-2, rtol=2e-2)

    print("KERNEL_OK")
</pallas_src>

<mosaic_0001>
module attributes {stable_mosaic.version = 11 : i64} {
  func.func @_update_gate_kernel(%arg0: i32, %arg1: memref<2x16xf32, #tpu.memory_space<vmem>>, %arg2: memref<2x32xf32, #tpu.memory_space<vmem>>, %arg3: memref<1x16x128xf32, #tpu.memory_space<vmem>>, %arg4: memref<1x32x128xf32, #tpu.memory_space<vmem>>, %arg5: memref<2x128xf32, #tpu.memory_space<vmem>>) attributes {dimension_semantics = [#tpu.dimension_semantics<parallel>], iteration_bounds = array<i64: 1>, scalar_prefetch = 0 : i64, scratch_operands = 0 : i64, tpu.core_type = #tpu.core_type<tc>, window_params = [{pipeline_mode = #tpu.pipeline_mode<synchronous>, transform_indices = @transform_0, window_bounds = array<i64: 2, 16>}, {pipeline_mode = #tpu.pipeline_mode<synchronous>, transform_indices = @transform_1, window_bounds = array<i64: 2, 32>}, {transform_indices = @transform_2, window_bounds = array<i64: 1, 16, 128>}, {transform_indices = @transform_3, window_bounds = array<i64: 1, 32, 128>}, {transform_indices = @transform_4, window_bounds = array<i64: 2, 128>}]} {
    %c0 = arith.constant 0 : index
    %c0_0 = arith.constant 0 : index
    %0 = vector.load %arg1[%c0, %c0_0] : memref<2x16xf32, #tpu.memory_space<vmem>>, vector<2x16xf32>
    %c0_1 = arith.constant 0 : index
    %c0_2 = arith.constant 0 : index
    %1 = vector.load %arg2[%c0_1, %c0_2] : memref<2x32xf32, #tpu.memory_space<vmem>>, vector<2x32xf32>
    %c0_3 = arith.constant 0 : index
    %c0_4 = arith.constant 0 : index
    %c0_5 = arith.constant 0 : index
    %2 = vector.load %arg3[%c0_3, %c0_4, %c0_5] : memref<1x16x128xf32, #tpu.memory_space<vmem>>, vector<1x16x128xf32>
    %3 = vector.shape_cast %2 : vector<1x16x128xf32> to vector<16x128xf32>
    %cst = arith.constant dense<0.000000e+00> : vector<2x128xf32>
    %4 = tpu.matmul %0, %3, %cst {dimension_numbers = #tpu.dot_dimension_numbers<[1], [0], [0], [1], [0, 0, 1, 1], [], []>} : vector<2x16xf32>, vector<16x128xf32>, vector<2x128xf32> -> vector<2x128xf32>
    %c0_6 = arith.constant 0 : index
    %c0_7 = arith.constant 0 : index
    %c0_8 = arith.constant 0 : index
    %5 = vector.load %arg4[%c0_6, %c0_7, %c0_8] : memref<1x32x128xf32, #tpu.memory_space<vmem>>, vector<1x32x128xf32>
    %6 = vector.shape_cast %5 : vector<1x32x128xf32> to vector<32x128xf32>
    %cst_9 = arith.constant dense<0.000000e+00> : vector<2x128xf32>
    %7 = tpu.matmul %1, %6, %cst_9 {dimension_numbers = #tpu.dot_dimension_numbers<[1], [0], [0], [1], [0, 0, 1, 1], [], []>} : vector<2x32xf32>, vector<32x128xf32>, vector<2x128xf32> -> vector<2x128xf32>
    %8 = arith.addf %4, %7 : vector<2x128xf32>
    %9 = arith.negf %8 : vector<2x128xf32>
    %10 = math.exp %9 : vector<2x128xf32>
    %cst_10 = arith.constant 1.000000e+00 : f32
    %11 = vector.broadcast %cst_10 : f32 to vector<2x128xf32>
    %12 = arith.addf %11, %10 : vector<2x128xf32>
    %13 = arith.divf %11, %12 : vector<2x128xf32>
    %c0_11 = arith.constant 0 : index
    %c0_12 = arith.constant 0 : index
    %14 = vector.load %arg5[%c0_11, %c0_12] : memref<2x128xf32, #tpu.memory_space<vmem>>, vector<2x128xf32>
    tpu.vector_store %arg5[%c0_11, %c0_12], %13 {strides = array<i32>} : memref<2x128xf32, #tpu.memory_space<vmem>>, vector<2x128xf32>,
    return
  }
  func.func @transform_0(%arg0: i32) -> (i32, i32) {
    %c0_i32 = arith.constant 0 : i32
    %c0_i32_0 = arith.constant 0 : i32
    %c0_i32_1 = arith.constant 0 : i32
    return %c0_i32, %c0_i32_0 : i32, i32
  }
  func.func @transform_1(%arg0: i32) -> (i32, i32) {
    %c0_i32 = arith.constant 0 : i32
    %c0_i32_0 = arith.constant 0 : i32
    %c0_i32_1 = arith.constant 0 : i32
    return %c0_i32, %c0_i32_0 : i32, i32
  }
  func.func @transform_2(%arg0: i32) -> (i32, i32, i32) {
    %c0_i32 = arith.constant 0 : i32
    %c0_i32_0 = arith.constant 0 : i32
    %c0_i32_1 = arith.constant 0 : i32
    return %arg0, %c0_i32, %c0_i32_0 : i32, i32, i32
  }
  func.func @transform_3(%arg0: i32) -> (i32, i32, i32) {
    %c0_i32 = arith.constant 0 : i32
    %c0_i32_0 = arith.constant 0 : i32
    %c0_i32_1 = arith.constant 0 : i32
    return %arg0, %c0_i32, %c0_i32_0 : i32, i32, i32
  }
  func.func @transform_4(%arg0: i32) -> (i32, i32) {
    %c0_i32 = arith.constant 0 : i32
    %c0_i32_0 = arith.constant 0 : i32
    return %c0_i32, %arg0 : i32, i32
  }
}

</mosaic_0001>

<bundles_post_ra>
// kernel: tpu_custom_call.1
= control target key start
LH: loop header
LB: loop body
LE: loop exit
PB: predicated region body
PF: predicated region fallthrough
CT: control target
= control target key end

     0   :  { %9 = vsyncpa [#allocation3], 0  ;;  %s448_s0 = inlined_call_operand.hbm [shape: f32[2,16], index: 0, kind: input, shape index: {}]   ;;  %s449_s1 = inlined_call_operand.hbm [shape: f32[2,32], index: 1, kind: input, shape index: {}]   ;;  %s450_s2 = inlined_call_operand.hbm [shape: f32[1,16,128], index: 2, kind: input, shape index: {}]   ;;  %s451_s3 = inlined_call_operand.hbm [shape: f32[1,32,128], index: 3, kind: input, shape index: {}]   ;;  %s452_s4 = inlined_call_operand.hbm [shape: f32[2,128], index: 4, kind: output, shape index: {}]  }
   0x1   :  { %10 = vsyncpa [#allocation6], 0 }
   0x2   :  { %11 = vsyncpa [#allocation9], 0 }
   0x3   :  { %12 = vsyncpa [#allocation4], 0  ;;  %s399_s15 = smov [#allocation5]   ;;  %s400_s17 = smov [#allocation2]  }
   0x4   :  { %s29_s16 = sshll.u32 %s399_s15, 4  ;;  %s19_s18 = sshll.u32 %s400_s17, 4  ;;  %s30_s16 = int_to_ptr.vmem [resolvable:$true] %s29_s16  ;;  %s20_s18 = int_to_ptr.vmem [resolvable:$true] %s19_s18 }
   0x5   :  { %s299_s19 = scalar_lea.vmem %s30_s16, 32  ;;  %p304_p1 = scmp.lt.s32.totalorder %s30_s16, %s30_s16 }
   0x6   :  { %p300_p0 = scmp.ne.s32.totalorder %s30_s16, %s299_s19  ;;  %p305_p2 = scmp.lt.s32.totalorder %s299_s19, %s299_s19 }
   0x8   :  { %p306_p3 = por %p305_p2, %p304_p1 }
   0xa   :  { %p307_p4 = pnand %p306_p3, %p300_p0 }
   0xc   :  { %310 = shalt.err (!%p307_p4)
}
   0xd   :  { %32 = dma.hbm_to_vmem [thread:$0]  %s449_s1, 32, %s30_s16, [#allocation6]  }
   0xe   :  { %s319_s22 = scalar_lea.vmem %s20_s18, 32  ;;  %p324_p6 = scmp.lt.s32.totalorder %s20_s18, %s20_s18 }
   0xf   :  { %p320_p5 = scmp.ne.s32.totalorder %s20_s18, %s319_s22  ;;  %p325_p7 = scmp.lt.s32.totalorder %s319_s22, %s319_s22 }
  0x11   :  { %p326_p8 = por %p325_p7, %p324_p6 }
  0x13   :  { %p327_p9 = pnand %p326_p8, %p320_p5 }
  0x15   :  { %330 = shalt.err (!%p327_p9)
}
  0x16   :  { %22 = dma.hbm_to_vmem [thread:$0]  %s448_s0, 32, %s20_s18, [#allocation3]  }
  0x17   :  { %s401_s25 = smov [#allocation7]  }
  0x18   :  { %s38_s26 = sshll.u32 %s401_s25, 4  ;;  %s39_s26 = int_to_ptr.vmem [resolvable:$true] %s38_s26 }
  0x19   :  { %s339_s27 = scalar_lea.vmem %s39_s26, 256  ;;  %p344_p11 = scmp.lt.s32.totalorder %s39_s26, %s39_s26 }
  0x1a   :  { %p340_p10 = scmp.ne.s32.totalorder %s39_s26, %s339_s27  ;;  %p345_p12 = scmp.lt.s32.totalorder %s339_s27, %s339_s27 }
  0x1c   :  { %p346_p13 = por %p345_p12, %p344_p11 }
  0x1e   :  { %p347_p0 = pnand %p346_p13, %p340_p10 }
  0x20   :  { %350 = shalt.err (!%p347_p0)
}
  0x21   :  { %s402_s1 = smov 128   ;;  %s403_s28 = smov 8  }
  0x22   :  { %44 = dma.hbm_to_vmem [thread:$0]  %s450_s2, 256, %s39_s26, [#allocation6], %s402_s1, %s402_s1, %s403_s28  }
  0x23   :  { %s404_s5 = smov [#allocation8]  }
  0x24   :  { %s50_s6 = sshll.u32 %s404_s5, 4  ;;  %s51_s6 = int_to_ptr.vmem [resolvable:$true] %s50_s6 }
  0x25   :  { %s359_s0 = scalar_lea.vmem %s51_s6, 512  ;;  %p364_p2 = scmp.lt.s32.totalorder %s51_s6, %s51_s6 }
  0x26   :  { %p360_p1 = scmp.ne.s32.totalorder %s51_s6, %s359_s0  ;;  %p365_p3 = scmp.lt.s32.totalorder %s359_s0, %s359_s0 }
  0x28   :  { %p366_p4 = por %p365_p3, %p364_p2 }
  0x2a   :  { %p367_p5 = pnand %p366_p4, %p360_p1 }
  0x2c   :  { %370 = shalt.err (!%p367_p5)
}
  0x2d   :  { %56 = dma.hbm_to_vmem [thread:$0]  %s451_s3, 512, %s51_s6, [#allocation9], %s402_s1, %s402_s1, %s403_s28  }
  0x2e   :  { %391 = dma.done.wait [#allocation3], 32  }
  0x2f   :  { %392 = vsyncadd [#allocation3], 4294967264 }
  0x30   :  { %393 = dma.done.wait [#allocation6], 288  }
  0x31   :  { %394 = vsyncadd [#allocation6], 4294967008 }
  0x32   :  { %395 = dma.done.wait [#allocation9], 512  }
  0x33   :  { %396 = vsyncadd [#allocation9], 4294966784  ;;  %v405_v0 = vmov 0.0   ;;  %vm406_vm0 = vmmov 0   ;;  %v76_v1 = vld [vmem:[#allocation8 + $0x18] sm:$0xff]  ;;  %v75_v2 = vld [vmem:[#allocation8 + $0x10] sm:$0xff] }
  0x34   :  { %260 = vmatprep.subr.mxu0 %v405_v0  ;;  %271 = vmatprep.subr.mxu1 %v405_v0  ;;  %v72_v3 = vld [vmem:[#allocation7 + $0x8] sm:$0xff]  ;;  %v71_v4 = vld [vmem:[#allocation7] sm:$0xff]  ;;  %v69_v5 = vld [vmem:[#allocation2] sm:$0x3]  ;;  %vm151_vm1 = vcmask 130048   ;;  %vm77_vm2 = vcmask 261120  }
  0x35   :  { %275 = vmatprep.mubr.msk.f32.mxu1 %vm406_vm0, %v405_v0  ;;  %268 = vmatprep.mubr.msk.f32.mxu0 %vm406_vm0, %v405_v0  ;;  %v74_v6 = vld [vmem:[#allocation8 + $0x8] sm:$0xff]  ;;  %v73_v7 = vld [vmem:[#allocation8] sm:$0xff]  ;;  %s407_s2 = smov [#allocation10]  }
  0x36   :  { %261 = vmatpush3.msra.mxu0 %v76_v1  ;;  %272 = vmatpush3.msra.mxu1 %v72_v3  ;;  %v70_v8 = vld [vmem:[#allocation5] sm:$0x3]  ;;  %s238_s3 = sshll.u32 %s407_s2, 4  ;;  %s239_s3 = int_to_ptr.vmem [resolvable:$true] %s238_s3 }
  0x37   :  { %262 = vmatprep.subr.mxu0 %v405_v0  ;;  %273 = vmatprep.subr.mxu1 %v405_v0  ;;  %s371_s9 = scalar_lea.vmem %s239_s3, 32  ;;  %p376_p7 = scmp.lt.s32.totalorder %s239_s3, %s239_s3 }
  0x38   :  { %263 = vmatpush3.msra.mxu0 %v75_v2  ;;  %274 = vmatpush3.msra.mxu1 %v71_v4  ;;  %p372_p6 = scmp.ne.s32.totalorder %s239_s3, %s371_s9  ;;  %p377_p8 = scmp.lt.s32.totalorder %s371_s9, %s371_s9 }
  0x39   :  { %264 = vmatprep.subr.mxu0 %v405_v0  ;;  %276 = vmatmul.mubr.msk.f32.vlgmr.msra.gmra.mxu1 %vm151_vm1, %v69_v5 }
  0x3a   :  { %265 = vmatpush3.msra.mxu0 %v74_v6  ;;  %p378_p9 = por %p377_p8, %p376_p7 }
  0x3b   :  { %266 = vmatprep.subr.mxu0 %v405_v0 }
  0x3c   :  { %267 = vmatpush3.msra.mxu0 %v73_v7  ;;  %p379_p10 = pnand %p378_p9, %p372_p6 }
  0x3d   :  { %269 = vmatmul.mubr.msk.f32.vlgmr.msra.gmra.mxu0 %vm77_vm2, %v70_v8 }
  0xf9   :  { %v221_v9 = vpop.f32.mrf.mxu1 }
  0xfb   :  { %v277_v10 = vpop.f32.mrf.mxu1 }
  0xfd   :  { %v147_v11 = vpop.f32.mrf.mxu0 }
  0xfe   :  { %v222_v12 = vadd.f32 %v221_v9, %v147_v11 }
  0xff   :  { %v270_v13 = vpop.f32.mrf.mxu0 }
 0x100   :  { %v251_v14 = vmul.f32 -1.442695, %v222_v12 }
 0x102   :  { %287 = vpow2.f32 %v251_v14 }
 0x10f   :  { %v288_v15 = vpop.eup %287 }
 0x110   :  { %v228_v16 = vadd.f32 1.0, %v288_v15 }
 0x112   :  { %289 = vrcp.f32 %v228_v16 }
 0x11f   :  { %v290_v17 = vpop.eup %289 }
 0x120   :  { %231 = vst [vmem:[#allocation10] sm:$0x3] %v290_v17 }
 0x121   :  { %382 = shalt.err (!%p379_p10)
}
 0x122   :  { %241 = dma.vmem_to_hbm [thread:$0]  %s239_s3, 32, %s452_s4, [#allocation4]  }
 0x123   :  { %397 = dma.done.wait [#allocation4], 32  }
 0x124   :  { %398 = vsyncadd [#allocation4], 4294967264 }
 0x125   :  { %245 = vsyncpa [#allocation3], 1 }
 0x126   :  { %246 = vsyncpa [#allocation6], 1 }
 0x127   :  { %247 = vsyncpa [#allocation9], 1 }
 0x128   :  { %248 = vsyncpa [#allocation4], 1 }

</bundles_post_ra>
